<compile_context>
chip_gen: v5e
topology: v5e:2x2
jax: 0.10.0
libtpu: 0.0.40
codegen_flags: <defaults>
</compile_context>

<pallas_src>
import math

import jax
import jax.numpy as jnp
from jax.experimental import pallas as pl
from jax.experimental.pallas import tpu as pltpu


_SMALL_BYPASS_BYTES = 256 * 1024  # below this, pallas launch overhead dominates


def _cdiv(a: int, b: int) -> int:
    return (a + b - 1) // b


def _round_up(x: int, m: int) -> int:
    return _cdiv(x, m) * m


def _row_quantum(dtype) -> int:
    # Sublane quantum: 8 for 4-byte, 16 for 2-byte, 32 for 1-byte dtypes.
    itemsize = jnp.dtype(dtype).itemsize
    return max(8, (8 * 4) // itemsize)


def _vmem_capacity_bytes() -> int:
    try:
        return int(pltpu.get_tpu_info().vmem_capacity_bytes)
    except Exception:
        return 64 * 1024 * 1024  # conservative (v7x per-TensorCore)


def _concat_kernel(vi_ref, kano_ref, out_ref):
    # Build the full-width tile in vregs and do a single lane-dense store.
    out_ref[...] = jnp.concatenate([vi_ref[...], kano_ref[...]], axis=-1)


def _make_packed_kernel(pack: int, d_vi: int, d_kano: int):
    # Inputs arrive as `pack` consecutive atom rows flattened onto the lane
    # axis; interleave them so each output block row is the `pack` concatenated
    # per-atom [vi | kano] rows, then issue one lane-dense (multiple-of-128)
    # store.
    def kernel(vi_ref, kano_ref, out_ref):
        vi = vi_ref[...]
        kano = kano_ref[...]
        pieces = []
        for j in range(pack):
            pieces.append(vi[:, j * d_vi:(j + 1) * d_vi])
            pieces.append(kano[:, j * d_kano:(j + 1) * d_kano])
        out_ref[...] = jnp.concatenate(pieces, axis=-1)

    return kernel


def concat_last_dim(vi: jax.Array, kano: jax.Array, *, tile_rows: int | None = None) -> jax.Array:
    """TPU-optimized equivalent of torch.concat([vi, kano], dim=-1) for 2-D inputs."""
    assert vi.ndim == 2 and kano.ndim == 2, "expected [num_atoms, feat] inputs"
    assert vi.shape[0] == kano.shape[0], "leading (atom) dims must match"
    assert vi.dtype == kano.dtype, "dtypes must match for concat"

    n, d_vi = vi.shape
    d_kano = kano.shape[-1]
    d_out = d_vi + d_kano
    dtype = vi.dtype
    itemsize = jnp.dtype(dtype).itemsize

    if n == 0:
        return jnp.zeros((0, d_out), dtype)

    # Tiny inputs: a pallas_call's fixed launch + pipeline prologue (µs) dwarfs a
    # few-KB copy; XLA's native concat is strictly faster and fusable.
    if n * d_out * itemsize < _SMALL_BYPASS_BYTES:
        return jnp.concatenate([vi, kano], axis=-1)

    # --- choose packed (lane-dense) vs. plain layout -------------------------
    pack = 128 // math.gcd(d_out, 128)  # smallest group making d_out*pack % 128 == 0
    use_packed = (pack > 1) and (pack <= 8) and (n % pack == 0)

    if use_packed:
        rows = n // pack
        w_vi, w_kano, w_out = d_vi * pack, d_kano * pack, d_out * pack
        vi_in = vi.reshape(rows, w_vi)        # free reshape (row-major)
        kano_in = kano.reshape(rows, w_kano)  # free reshape (row-major)
        kernel = _make_packed_kernel(pack, d_vi, d_kano)
    else:
        rows = n
        w_vi, w_kano, w_out = d_vi, d_kano, d_out
        vi_in, kano_in = vi, kano
        kernel = _concat_kernel

    # --- generation-aware row tile -------------------------------------------
    quantum = _row_quantum(dtype)
    # Bytes per block row in VMEM, including lane padding to 128.
    per_row = (_round_up(w_vi, 128) + _round_up(w_kano, 128) + _round_up(w_out, 128)) * itemsize
    vmem_cap = _vmem_capacity_bytes()
    budget = min(vmem_cap // 3, 32 * 1024 * 1024)  # ~21 MiB on v7x, 32 MiB on v5e/v6e
    cap_rows = max(quantum, (budget // (2 * per_row)) // quantum * quantum)  # 2x: double-buffered

    if tile_rows is not None:
        tn = _round_up(max(1, int(tile_rows)), quantum)
    else:
        # >= 2 grid steps when the input is big enough, so both v7x TCs engage.
        tn = min(cap_rows, max(quantum, _round_up(_cdiv(rows, 2), quantum)))
    if rows <= quantum:
        tn = rows  # full-extent block satisfies the layout rule for tiny row counts
    tn = min(tn, _round_up(rows, quantum))

    grid = (_cdiv(rows, tn),)
    vmem_limit = int(min(vmem_cap, 2 * per_row * tn + 16 * 1024 * 1024))

    cost = pl.CostEstimate(
        flops=0,
        transcendentals=0,
        bytes_accessed=2 * n * d_out * itemsize,  # read everything + write everything
    )

    out_flat = pl.pallas_call(
        kernel,
        out_shape=jax.ShapeDtypeStruct((rows, w_out), dtype),
        grid_spec=pltpu.PrefetchScalarGridSpec(
            num_scalar_prefetch=0,
            grid=grid,
            in_specs=[
                pl.BlockSpec((tn, w_vi), lambda i: (i, 0)),
                pl.BlockSpec((tn, w_kano), lambda i: (i, 0)),
            ],
            out_specs=pl.BlockSpec((tn, w_out), lambda i: (i, 0)),
        ),
        compiler_params=pltpu.CompilerParams(
            dimension_semantics=("parallel",),
            vmem_limit_bytes=vmem_limit,
        ),
        cost_estimate=cost,
    )(vi_in, kano_in)

    if use_packed:
        return out_flat.reshape(n, d_out)
    return out_flat


class CombinedPKano:
    """JAX/Pallas port of Networks/kano/combind_p_kano.py::CombinedPKano."""

    def __call__(self, runtime_vars: dict) -> dict:
        kano_atom_embed = runtime_vars["kano_atom_embed"]
        sphysnet_embed = runtime_vars["vi"]
        combined_embed = concat_last_dim(sphysnet_embed, kano_atom_embed)
        runtime_vars["kano_atom_embed"] = combined_embed
        return runtime_vars


if __name__ == "__main__":
    key = jax.random.PRNGKey(0)
    k1, k2, k3, k4, k5, k6 = jax.random.split(key, 6)

    # Small per-atom embeddings, consistent with the module.
    num_atoms = 8
    d_vi = 32    # sphysnet per-atom embedding dim
    d_kano = 64  # kano per-atom embedding dim

    vi = jax.random.normal(k1, (num_atoms, d_vi), dtype=jnp.float32)
    kano_atom_embed = jax.random.normal(k2, (num_atoms, d_kano), dtype=jnp.float32)

    module = CombinedPKano()
    out_vars = module({"kano_atom_embed": kano_atom_embed, "vi": vi})
    combined = out_vars["kano_atom_embed"]
    jax.block_until_ready(combined)
    ref = jnp.concatenate([vi, kano_atom_embed], axis=-1)
    assert combined.shape == (num_atoms, d_vi + d_kano)
    assert combined.dtype == vi.dtype
    assert bool(jnp.array_equal(combined, ref))

    # Pallas lane-dense (packed) path: atom count divisible by pack=4 and above
    # the small-input bypass threshold.
    n1 = 1032
    vi1 = jax.random.normal(k3, (n1, d_vi), dtype=jnp.float32)
    kano1 = jax.random.normal(k4, (n1, d_kano), dtype=jnp.float32)
    out1 = concat_last_dim(vi1, kano1)
    jax.block_until_ready(out1)
    assert bool(jnp.array_equal(out1, jnp.concatenate([vi1, kano1], axis=-1)))

    # Pallas plain path with a ragged final block: atom count not divisible by 4.
    n2 = 1030
    vi2 = jax.random.normal(k5, (n2, d_vi), dtype=jnp.float32)
    kano2 = jax.random.normal(k6, (n2, d_kano), dtype=jnp.float32)
    out2 = concat_last_dim(vi2, kano2)
    jax.block_until_ready(out2)
    assert bool(jnp.array_equal(out2, jnp.concatenate([vi2, kano2], axis=-1)))

    print("KERNEL_OK")
</pallas_src>

<mosaic_0001>
module attributes {stable_mosaic.version = 11 : i64} {
  func.func @kernel(%arg0: i32, %arg1: memref<136x128xf32, #tpu.memory_space<vmem>>, %arg2: memref<136x256xf32, #tpu.memory_space<vmem>>, %arg3: memref<136x384xf32, #tpu.memory_space<vmem>>) attributes {dimension_semantics = [#tpu.dimension_semantics<parallel>], iteration_bounds = array<i64: 2>, scalar_prefetch = 0 : i64, scratch_operands = 0 : i64, tpu.core_type = #tpu.core_type<tc>, window_params = [{transform_indices = @transform_0, window_bounds = array<i64: 136, 128>}, {transform_indices = @transform_1, window_bounds = array<i64: 136, 256>}, {transform_indices = @transform_2, window_bounds = array<i64: 136, 384>}]} {
    %c0 = arith.constant 0 : index
    %c0_0 = arith.constant 0 : index
    %0 = vector.load %arg1[%c0, %c0_0] : memref<136x128xf32, #tpu.memory_space<vmem>>, vector<136x128xf32>
    %c0_1 = arith.constant 0 : index
    %c0_2 = arith.constant 0 : index
    %1 = vector.load %arg2[%c0_1, %c0_2] : memref<136x256xf32, #tpu.memory_space<vmem>>, vector<136x256xf32>
    %2 = vector.extract_strided_slice %0 {offsets = [0, 0], sizes = [136, 32], strides = [1, 1]} : vector<136x128xf32> to vector<136x32xf32>
    %3 = vector.extract_strided_slice %1 {offsets = [0, 0], sizes = [136, 64], strides = [1, 1]} : vector<136x256xf32> to vector<136x64xf32>
    %4 = vector.extract_strided_slice %0 {offsets = [0, 32], sizes = [136, 32], strides = [1, 1]} : vector<136x128xf32> to vector<136x32xf32>
    %5 = vector.extract_strided_slice %1 {offsets = [0, 64], sizes = [136, 64], strides = [1, 1]} : vector<136x256xf32> to vector<136x64xf32>
    %6 = vector.extract_strided_slice %0 {offsets = [0, 64], sizes = [136, 32], strides = [1, 1]} : vector<136x128xf32> to vector<136x32xf32>
    %7 = vector.extract_strided_slice %1 {offsets = [0, 128], sizes = [136, 64], strides = [1, 1]} : vector<136x256xf32> to vector<136x64xf32>
    %8 = vector.extract_strided_slice %0 {offsets = [0, 96], sizes = [136, 32], strides = [1, 1]} : vector<136x128xf32> to vector<136x32xf32>
    %9 = vector.extract_strided_slice %1 {offsets = [0, 192], sizes = [136, 64], strides = [1, 1]} : vector<136x256xf32> to vector<136x64xf32>
    %10 = tpu.concatenate %2, %3, %4, %5, %6, %7, %8, %9 in 1 : vector<136x32xf32>, vector<136x64xf32>, vector<136x32xf32>, vector<136x64xf32>, vector<136x32xf32>, vector<136x64xf32>, vector<136x32xf32>, vector<136x64xf32> -> vector<136x384xf32>
    %c0_3 = arith.constant 0 : index
    %c0_4 = arith.constant 0 : index
    %11 = vector.load %arg3[%c0_3, %c0_4] : memref<136x384xf32, #tpu.memory_space<vmem>>, vector<136x384xf32>
    tpu.vector_store %arg3[%c0_3, %c0_4], %10 {strides = array<i32>} : memref<136x384xf32, #tpu.memory_space<vmem>>, vector<136x384xf32>,
    return
  }
  func.func @transform_0(%arg0: i32) -> (i32, i32) {
    %c0_i32 = arith.constant 0 : i32
    %c0_i32_0 = arith.constant 0 : i32
    return %arg0, %c0_i32 : i32, i32
  }
  func.func @transform_1(%arg0: i32) -> (i32, i32) {
    %c0_i32 = arith.constant 0 : i32
    %c0_i32_0 = arith.constant 0 : i32
    return %arg0, %c0_i32 : i32, i32
  }
  func.func @transform_2(%arg0: i32) -> (i32, i32) {
    %c0_i32 = arith.constant 0 : i32
    %c0_i32_0 = arith.constant 0 : i32
    return %arg0, %c0_i32 : i32, i32
  }
}

</mosaic_0001>

<bundles_post_ra>
// kernel: tpu_custom_call.1
= control target key start
LH: loop header
LB: loop body
LE: loop exit
PB: predicated region body
PF: predicated region fallthrough
CT: control target
= control target key end

     0   :  { %7 = vsyncpa [#allocation3], 0  ;;  %s1924_s0 = inlined_call_operand.hbm [shape: f32[258,128], index: 0, kind: input, shape index: {}]   ;;  %s1925_s1 = inlined_call_operand.hbm [shape: f32[258,256], index: 1, kind: input, shape index: {}]   ;;  %s1926_s2 = inlined_call_operand.hbm [shape: f32[258,384], index: 2, kind: output, shape index: {}]  }
   0x1   :  { %9 = vsyncpa [#allocation3 + $0x1], 0 }
   0x2   :  { %10 = vsyncpa [#allocation6], 0 }
   0x3   :  { %12 = vsyncpa [#allocation6 + $0x1], 0 }
   0x4   :  { %13 = vsyncpa [#allocation4], 0 }
   0x5   :  { %15 = vsyncpa [#allocation4 + $0x1], 0  ;;  %s1094_s9 = smov 0   ;;  %s1096_s10 = smov 0  }
   0x6   :  { %s1098_s11 = smov 0   ;;  %s1100_s12 = smov 0  }
   0x7 LB: > { %s1115_s13 = sadd.s32 4294967295, %s1065_s12   ;;  %s822_s14 = sadd.s32 4294967294, %s1065_s12   ;;  %s1065_s12 = sphi %s1100_s12, %s1963_s12   ;;  %s1061_s11 = sphi %s1098_s11, %s1962_s11   ;;  %s1057_s10 = sphi %s1096_s10, %s1961_s10   ;;  %s1053_s9 = sphi %s1094_s9, %s1960_s9  }
   0x8   : > { %s1119_s15 = sadd.s32 1, %s1065_s12   ;;  %s28_s16 = sadd.s32 1, %s1061_s11 }
   0x9   : > { %s25_s17 = ssub.s32 %s1065_s12, %s1119_s15  ;;  %p35_p0 = scmp.ne.s32.totalorder %s1061_s11, %s1057_s10 }
   0xa   : > { %p26_p1 = scmp.eq.s32.totalorder %s25_s17, 0  ;;  %p36_p2 = scmp.eq.s32.totalorder %s1065_s12, 0 }
   0xb   : > { %p41_p3 = scmp.ne.s32.totalorder %s1057_s10, %s1053_s9  ;;  %p42_p4 = scmp.eq.s32.totalorder %s1115_s13, 0 }
   0xc   : > { %s1131_s18 = scalar_select %p26_p1, %s1061_s11, %s28_s16  }
   0xd   : > { %p1133_p5 = por %p36_p2, %p35_p0  ;;  %p1137_p6 = por %p42_p4, %p41_p3 }
   0xe   : > { %p91_p7 = scmp.eq.s32.totalorder %s1115_s13, 1  ;;  %p97_p8 = scmp.eq.s32.totalorder %s822_s14, 1 }
   0xf   : > { %p1927_p11 = scmp.ge.s32.totalorder %s1065_s12, 2 }
  0x10   : > { %p1142_p9 = por %p91_p7, %p35_p0  ;;  %p1146_p10 = por %p97_p8, %p41_p3 }
  0x11   : > { %113 = sbr.rel (%p1927_p11) target bundleno = 98 (0x62), region = 16 }
  0x12   : > { %s1938_s22 = scalar_select %p1146_p10, 1, 0 }
  0x16   : > { %116 = sbr.rel (!%p1133_p5) target bundleno = 60 (0x3c), region = 20  ;;  %s117_s23 = sand.u32 (%p1133_p5), 1, %s1061_s11  }
  0x17   : > { %s122_s24 = smul.u32 (%p1133_p5), 17, %s1065_s12  ;;  %s1160_s30 = scalar_lea.sflag (%p1133_p5), [#allocation3], %s117_s23 }
  0x18   : > { %s850_s25 = smul.u32 (%p1133_p5), 136, %s117_s23 }
  0x19   : > { %s123_s26 = ssub.s32 (%p1133_p5), 33, %s122_s24 }
  0x1a   : > { %p124_p12 = scmp.lt.s32.totalorder (%p1133_p5), %s123_s26, 17  ;;  %s121_s3 = scalar_lea.vmem (%p1133_p5), [#allocation2], %s850_s25 }
  0x1c   : > { %s1965_s26 = smov (!%p124_p12, %s123_s26), 17 }
  0x1d   : > { %s825_s27 = sshll.u32 %s1965_s26, 3 }
  0x1e   : > { %s127_s28 = ssub.s32 136, %s825_s27 }
  0x1f   : > { %s128_s29 = sshll.u32 %s127_s28, 4 }
  0x20   : > { %129 = vsyncadd %s1160_s30, %s128_s29  ;;  %p1163_p13 = scmp.ne.s32.totalorder %s825_s27, 0  ;;  %s845_s5 = smul.u32 136, %s1065_s12 }
  0x21   : > { %s1168_s6 = sshll.u32 %s121_s3, 4  ;;  %s829_s7 = sshll.u32 %s1965_s26, 7  ;;  %s137_s6 = int_to_ptr.vmem [resolvable:$true] %s1168_s6 }
  0x22   : > { %s132_s16 = scalar_lea.hbm %s1924_s0, %s845_s5  ;;  %s908_s24 = sshrl.u32 %s829_s7, 4 }
  0x23   : > { %s134_s17 = sshll.u32 %s132_s16, 4  ;;  %s917_s29 = scalar_lea.hbm %s1924_s0, 264  ;;  %s1175_s17 = int_to_ptr.hbm [resolvable:$true] %s134_s17 }
  0x24   : > { %s906_s23 = sshra.s32 %s1175_s17, 4  ;;  %s907_s23 = int_to_ptr.hbm [resolvable:$true] %s906_s23 }
  0x25   : > { %s913_s25 = scalar_lea.hbm %s907_s23, %s908_s24  ;;  %p918_p3 = scmp.lt.s32.totalorder %s907_s23, %s1924_s0 }
  0x26   : > { %p914_p0 = scmp.ne.s32.totalorder %s907_s23, %s913_s25  ;;  %p919_p4 = scmp.lt.s32.totalorder %s917_s29, %s913_s25 }
  0x28   : > { %p915_p1 = pnand %p914_p0, %p1163_p13  ;;  %p920_p7 = por %p919_p4, %p918_p3 }
  0x2a   : > { %p916_p2 = pneg %p915_p1 }
  0x2c   : > { %p921_p8 = pnand %p920_p7, %p916_p2 }
  0x2e   : > { %924 = shalt.err (!%p921_p8)
}
  0x2f   : > { %s925_s8 = sshra.s32 %s137_s6, 4  ;;  %s1067_s16 = smov [#allocation2]   ;;  %s926_s8 = int_to_ptr.vmem [resolvable:$true] %s925_s8 }
  0x30   : > { %s932_s14 = scalar_lea.vmem %s926_s8, %s908_s24  ;;  %s936_s27 = scalar_lea.vmem %s1067_s16, 272 }
  0x31   : > { %p933_p12 = scmp.ne.s32.totalorder %s926_s8, %s932_s14  ;;  %p938_p11 = scmp.lt.s32.totalorder %s936_s27, %s932_s14 }
  0x33   : > { %p934_p0 = pnand %p933_p12, %p1163_p13 }
  0x35   : > { %p935_p1 = pneg %p934_p0 }
  0x37   : > { %p940_p10 = pnand %p938_p11, %p935_p1 }
  0x39   : > { %943 = shalt.err (!%p940_p10)
}
  0x3a   : > { %s1068_s23 = smov 128   ;;  %s1069_s25 = smov 8  }
  0x3b   : > { %142 = dma.hbm_to_vmem [thread:$0]  (%p1163_p13), %s1175_s17, %s829_s7, %s137_s6, %s1160_s30, %s1068_s23, %s1068_s23, %s1069_s25  }
  0x3c PF: > { %145 = sbr.rel (!%p1133_p5) target bundleno = 98 (0x62), region = 24  ;;  %s146_s24 = sand.u32 (%p1133_p5), 1, %s1061_s11  }
  0x3d   : > { %s151_s28 = smul.u32 (%p1133_p5), 17, %s1065_s12  ;;  %s1207_s14 = scalar_lea.sflag (%p1133_p5), [#allocation6], %s146_s24 }
  0x3e   : > { %s851_s29 = smul.u32 (%p1133_p5), 272, %s146_s24 }
  0x3f   : > { %s152_s3 = ssub.s32 (%p1133_p5), 33, %s151_s28 }
  0x40   : > { %p153_p10 = scmp.lt.s32.totalorder (%p1133_p5), %s152_s3, 17  ;;  %s150_s26 = scalar_lea.vmem (%p1133_p5), [#allocation5], %s851_s29 }
  0x42   : > { %s1967_s3 = smov (!%p153_p10, %s152_s3), 17 }
  0x43   : > { %s846_s5 = sshll.u32 %s1967_s3, 4 }
  0x44   : > { %s157_s8 = ssub.s32 272, %s846_s5 }
  0x45   : > { %s158_s4 = sshll.u32 %s157_s8, 4 }
  0x46   : > { %159 = vsyncadd %s1207_s14, %s158_s4  ;;  %p1210_p5 = scmp.ne.s32.totalorder %s846_s5, 0  ;;  %s849_s30 = smul.u32 272, %s1065_s12 }
  0x47   : > { %s1215_s6 = sshll.u32 %s150_s26, 4  ;;  %s836_s7 = sshll.u32 %s1967_s3, 8  ;;  %s168_s6 = int_to_ptr.vmem [resolvable:$true] %s1215_s6 }
  0x48   : > { %s163_s27 = scalar_lea.hbm %s1925_s1, %s849_s30  ;;  %s947_s24 = sshrl.u32 %s836_s7, 4 }
  0x49   : > { %s165_s23 = sshll.u32 %s163_s27, 4  ;;  %s956_s8 = scalar_lea.hbm %s1925_s1, 528  ;;  %s1222_s23 = int_to_ptr.hbm [resolvable:$true] %s165_s23 }
  0x4a   : > { %s945_s25 = sshra.s32 %s1222_s23, 4  ;;  %s946_s25 = int_to_ptr.hbm [resolvable:$true] %s945_s25 }
  0x4b   : > { %s952_s28 = scalar_lea.hbm %s946_s25, %s947_s24  ;;  %p957_p3 = scmp.lt.s32.totalorder %s946_s25, %s1925_s1 }
  0x4c   : > { %p953_p11 = scmp.ne.s32.totalorder %s946_s25, %s952_s28  ;;  %p958_p4 = scmp.lt.s32.totalorder %s956_s8, %s952_s28 }
  0x4e   : > { %p954_p13 = pnand %p953_p11, %p1210_p5  ;;  %p959_p7 = por %p958_p4, %p957_p3 }
  0x50   : > { %p955_p2 = pneg %p954_p13 }
  0x52   : > { %p960_p8 = pnand %p959_p7, %p955_p2 }
  0x54   : > { %963 = shalt.err (!%p960_p8)
}
  0x55   : > { %s964_s30 = sshra.s32 %s168_s6, 4  ;;  %s1070_s16 = smov [#allocation5]   ;;  %s965_s30 = int_to_ptr.vmem [resolvable:$true] %s964_s30 }
  0x56   : > { %s971_s17 = scalar_lea.vmem %s965_s30, %s947_s24  ;;  %s975_s27 = scalar_lea.vmem %s1070_s16, 544 }
  0x57   : > { %p972_p12 = scmp.ne.s32.totalorder %s965_s30, %s971_s17  ;;  %p977_p10 = scmp.lt.s32.totalorder %s975_s27, %s971_s17 }
  0x59   : > { %p973_p0 = pnand %p972_p12, %p1210_p5 }
  0x5b   : > { %p974_p1 = pneg %p973_p0 }
  0x5d   : > { %p979_p11 = pnand %p977_p10, %p974_p1 }
  0x5f   : > { %982 = shalt.err (!%p979_p11)
}
  0x60   : > { %s1071_s25 = smov 256   ;;  %s1072_s28 = smov 16  }
  0x61   : > { %173 = dma.hbm_to_vmem [thread:$0]  (%p1210_p5), %s1222_s23, %s836_s7, %s168_s6, %s1207_s14, %s1071_s25, %s1071_s25, %s1072_s28  }
  0x62 PF: > { %p837_p13 = scmp.ge.s32.totalorder %s1065_s12, 1  ;;  %p175_p2 = scmp.lt.s32.totalorder %s1065_s12, 3 }
  0x64   : > { %p176_p3 = pnand %p837_p13, %p175_p2 }
  0x66   : > { %179 = sbr.rel (%p176_p3) target bundleno = 450 (0x1c2), region = 28 }
  0x6b   : > { %s1250_s24 = sand.u32 1, %s1057_s10  }
  0x6c   : > { %s852_s29 = smul.u32 136, %s1250_s24  ;;  %s182_s5 = scalar_lea.sflag [#allocation3], %s1250_s24 }
  0x6e   : > { %s1254_s19 = scalar_lea.vmem [#allocation2], %s852_s29 }
  0x6f   : > { %1040 = dma.done.wait (%p1137_p6), %s182_s5, 2176  }
  0x70   : > { %1042 = vsyncadd (%p1137_p6), %s182_s5, 4294965120  ;;  %s853_s3 = smul.u32 272, %s1250_s24  ;;  %s192_s14 = scalar_lea.sflag [#allocation6], %s1250_s24 }
  0x72   : > { %s1262_s6 = scalar_lea.vmem [#allocation5], %s853_s3 }
  0x73   : > { %1044 = dma.done.wait (%p1137_p6), %s192_s14, 4352  }
  0x74   : > { %1046 = vsyncadd (%p1137_p6), %s192_s14, 4294962944  ;;  %v1269_v0 = vld [vmem:[%s1262_s6 + $0x40] sm:$0xff]  ;;  %s1073_s7 = smov 32   ;;  %v1284_v3 = vld [vmem:[%s1262_s6 + $0x50] sm:$0xff]  ;;  %s1074_s20 = smov 64   ;;  %vm545_vm0 = vcmask 261120  }
  0x75   : > { %v1272_v1 = vld [vmem:[%s1262_s6 + $0x20] sm:$0xff]  ;;  %315 = vrot.lane.b32.xlu2 %v1269_v0, %s1073_s7  ;;  %v1287_v4 = vld [vmem:[%s1262_s6 + $0x30] sm:$0xff]  ;;  %s854_s23 = smul.u32 408, %s1250_s24  ;;  %vm563_vm1 = vcmask 785408   ;;  %v1469_v48 = vld [vmem:[%s1262_s6 + $0x18] sm:$0xff]  ;;  %s1075_s4 = smov 96  }
  0x76   : > { %v1275_v2 = vld [vmem:[%s1262_s6] sm:$0xff]  ;;  %311 = vrot.lane.b32.xlu1 %v1272_v1, %s1073_s7  ;;  %v258_v5 = vld [vmem:[%s1262_s6 + $0x10] sm:$0xff]  ;;  %v1472_v49 = vld [vmem:[%s1262_s6 + $0x28] sm:$0xff]  ;;  %vm581_vm2 = vcmask 523264   ;;  %s702_s26 = scalar_lea.sflag [#allocation4], %s1250_s24  ;;  %s709_s30 = smul.u32 (%p1142_p9), 17, %s1115_s13 }
  0x77   : > { %307 = vrot.lane.b32.xlu0 %v1275_v2, %s1073_s7  ;;  %v1296_v6 = vld [vmem:[%s1262_s6 + $0x80] sm:$0xff]  ;;  %v1299_v7 = vld [vmem:[%s1262_s6 + $0x70] sm:$0xff]  ;;  %s1465_s8 = scalar_lea.vmem [#allocation7], %s854_s23  ;;  %v1475_v50 = vld [vmem:[%s1262_s6 + $0x8] sm:$0xff] }
  0x78   : > { %v268_v8 = vld [vmem:[%s1262_s6 + $0x60] sm:$0xff]  ;;  %v1308_v9 = vld [vmem:[%s1262_s6 + $0xb0] sm:$0xff]  ;;  %v1493_v56 = vld [vmem:[%s1262_s6 + $0x48] sm:$0xff]  ;;  %s710_s17 = ssub.s32 (%p1142_p9), 33, %s709_s30 }
  0x79   : > { %v276_v10 = vld [vmem:[%s1262_s6 + $0xa0] sm:$0xff]  ;;  %v274_v11 = vld [vmem:[%s1262_s6 + $0x90] sm:$0xff]  ;;  %v1496_v57 = vld [vmem:[%s1262_s6 + $0x58] sm:$0xff]  ;;  %p711_p6 = scmp.lt.s32.totalorder (%p1142_p9), %s710_s17, 17 }
  0x7a   : > { %v1317_v12 = vld [vmem:[%s1262_s6 + $0xe0] sm:$0xff]  ;;  %v282_v13 = vld [vmem:[%s1262_s6 + $0xd0] sm:$0xff]  ;;  %v1499_v58 = vld [vmem:[%s1262_s6 + $0x38] sm:$0xff] }
  0x7b   : > { %v280_v14 = vld [vmem:[%s1262_s6 + $0xc0] sm:$0xff]  ;;  %v1329_v16 = vld [vmem:[%s1254_s19] sm:$0xff]  ;;  %v1344_v20 = vld [vmem:[%s1254_s19 + $0x8] sm:$0xff] }
  0x7c   : > { %v1326_v15 = vld [vmem:[%s1262_s6 + $0x100] sm:$0xff]  ;;  %v286_v17 = vld [vmem:[%s1262_s6 + $0xf0] sm:$0xff] }
  0x7d   : > { %317 = vrot.lane.b32.xlu2 %v1284_v3, %s1073_s7  ;;  %v1338_v18 = vld [vmem:[%s1254_s19 + $0x10] sm:$0xff]  ;;  %v1341_v19 = vld [vmem:[%s1254_s19 + $0x18] sm:$0xff]  ;;  %v1353_v21 = vld [vmem:[%s1254_s19 + $0x28] sm:$0xff] }
  0x7e   : > { %313 = vrot.lane.b32.xlu1 %v1287_v4, %s1073_s7  ;;  %v1356_v22 = vld [vmem:[%s1254_s19 + $0x30] sm:$0xff]  ;;  %v1359_v23 = vld [vmem:[%s1254_s19 + $0x20] sm:$0xff]  ;;  %v1371_v25 = vld [vmem:[%s1254_s19 + $0x48] sm:$0xff] }
  0x7f   : > { %309 = vrot.lane.b32.xlu0 %v258_v5, %s1073_s7  ;;  %v1368_v24 = vld [vmem:[%s1254_s19 + $0x40] sm:$0xff]  ;;  %v1374_v26 = vld [vmem:[%s1254_s19 + $0x38] sm:$0xff]  ;;  %v1389_v29 = vld [vmem:[%s1254_s19 + $0x50] sm:$0xff] }
  0x80   : > { %v1383_v27 = vld [vmem:[%s1254_s19 + $0x58] sm:$0xff]  ;;  %v1386_v28 = vld [vmem:[%s1254_s19 + $0x60] sm:$0xff]  ;;  %v1398_v30 = vld [vmem:[%s1254_s19 + $0x70] sm:$0xff] }
  0x81   : > { %v1401_v31 = vld [vmem:[%s1254_s19 + $0x78] sm:$0xff]  ;;  %v1404_v32 = vld [vmem:[%s1254_s19 + $0x68] sm:$0xff]  ;;  %v1413_v33 = vld [vmem:[%s1254_s19 + $0x80] sm:$0xff] }
  0x82   : > { %1941 = vst [vmem:[#allocation11_spill] sm:$0xff] %v1401_v31 }
  0x83   : > { %1942 = vst [vmem:[#allocation12_spill] sm:$0xff] %v1413_v33 }
  0x85   : > { %323 = vrot.lane.b32.xlu2 %v1296_v6, %s1073_s7 }
  0x86   : > { %321 = vrot.lane.b32.xlu1 %v1299_v7, %s1073_s7 }
  0x87   : > { %319 = vrot.lane.b32.xlu0 %v268_v8, %s1073_s7 }
  0x8d   : > { %329 = vrot.lane.b32.xlu2 %v1308_v9, %s1073_s7 }
  0x8e   : > { %327 = vrot.lane.b32.xlu1 %v276_v10, %s1073_s7 }
  0x8f   : > { %325 = vrot.lane.b32.xlu0 %v274_v11, %s1073_s7 }
  0x95   : > { %335 = vrot.lane.b32.xlu2 %v1317_v12, %s1073_s7 }
  0x96   : > { %333 = vrot.lane.b32.xlu1 %v282_v13, %s1073_s7 }
  0x97   : > { %331 = vrot.lane.b32.xlu0 %v280_v14, %s1073_s7 }
  0x9d   : > { %375 = vrot.lane.b32.xlu2 %v1329_v16, %s1074_s20 }
  0x9e   : > { %339 = vrot.lane.b32.xlu1 %v1326_v15, %s1073_s7 }
  0x9f   : > { %337 = vrot.lane.b32.xlu0 %v286_v17, %s1073_s7 }
  0xa5   : > { %381 = vrot.lane.b32.xlu2 %v1341_v19, %s1074_s20 }
  0xa6   : > { %379 = vrot.lane.b32.xlu1 %v1338_v18, %s1074_s20 }
  0xa7   : > { %377 = vrot.lane.b32.xlu0 %v1344_v20, %s1074_s20 }
  0xad   : > { %387 = vrot.lane.b32.xlu2 %v1356_v22, %s1074_s20 }
  0xae   : > { %385 = vrot.lane.b32.xlu1 %v1353_v21, %s1074_s20 }
  0xaf   : > { %383 = vrot.lane.b32.xlu0 %v1359_v23, %s1074_s20 }
  0xb5   : > { %393 = vrot.lane.b32.xlu2 %v1371_v25, %s1074_s20 }
  0xb6   : > { %391 = vrot.lane.b32.xlu1 %v1368_v24, %s1074_s20 }
  0xb7   : > { %389 = vrot.lane.b32.xlu0 %v1374_v26, %s1074_s20 }
  0xbd   : > { %399 = vrot.lane.b32.xlu2 %v1386_v28, %s1074_s20 }
  0xbe   : > { %397 = vrot.lane.b32.xlu1 %v1383_v27, %s1074_s20 }
  0xbf   : > { %395 = vrot.lane.b32.xlu0 %v1389_v29, %s1074_s20 }
  0xc5   : > { %405 = vrot.lane.b32.xlu2 %v1401_v31, %s1074_s20 }
  0xc6   : > { %403 = vrot.lane.b32.xlu1 %v1398_v30, %s1074_s20 }
  0xc7   : > { %401 = vrot.lane.b32.xlu0 %v1404_v32, %s1074_s20 }
  0xcd   : > { %428 = vrot.lane.b32.xlu2 %v258_v5, %s1074_s20 }
  0xce   : > { %426 = vrot.lane.b32.xlu1 %v1275_v2, %s1074_s20  ;;  %v1523_v2 = vld [vmem:[%s1262_s6 + $0x68] sm:$0xff] }
  0xcf   : > { %407 = vrot.lane.b32.xlu0 %v1413_v33, %s1074_s20  ;;  %v1420_v34 = vpop.permute.xlu2 %315 }
  0xd5   : > { %434 = vrot.lane.b32.xlu2 %v1269_v0, %s1074_s20  ;;  %v1517_v0 = vld [vmem:[%s1262_s6 + $0x78] sm:$0xff] }
  0xd6   : > { %432 = vrot.lane.b32.xlu1 %v1287_v4, %s1074_s20 }
  0xd7   : > { %430 = vrot.lane.b32.xlu0 %v1272_v1, %s1074_s20  ;;  %v1428_v35 = vpop.permute.xlu2 %317  ;;  %v1520_v1 = vld [vmem:[%s1262_s6 + $0x88] sm:$0xff] }
  0xdd   : > { %440 = vrot.lane.b32.xlu2 %v1299_v7, %s1074_s20 }
  0xde   : > { %438 = vrot.lane.b32.xlu1 %v268_v8, %s1074_s20  ;;  %v1541_v8 = vld [vmem:[%s1262_s6 + $0xa8] sm:$0xff] }
  0xdf   : > { %436 = vrot.lane.b32.xlu0 %v1284_v3, %s1074_s20  ;;  %v1435_v36 = vpop.permute.xlu2 %323 }
  0xe5   : > { %446 = vrot.lane.b32.xlu2 %v276_v10, %s1074_s20  ;;  %v1547_v10 = vld [vmem:[%s1262_s6 + $0x98] sm:$0xff] }
  0xe6   : > { %444 = vrot.lane.b32.xlu1 %v274_v11, %s1074_s20 }
  0xe7   : > { %442 = vrot.lane.b32.xlu0 %v1296_v6, %s1074_s20  ;;  %v1441_v37 = vpop.permute.xlu2 %329 }
  0xe8   : > { %v1443_v38 = vpop.permute.xlu1 %311 }
  0xe9   : > { %v308_v39 = vpop.permute.xlu0 %307  ;;  %v548_v11 = vsel %vm545_vm0, %v1338_v18, %v1443_v38 }
  0xea   : > { %v546_v43 = vsel %vm545_vm0, %v1329_v16, %v308_v39 }
  0xed   : > { %452 = vrot.lane.b32.xlu2 %v282_v13, %s1074_s20 }
  0xee   : > { %450 = vrot.lane.b32.xlu1 %v280_v14, %s1074_s20 }
  0xef   : > { %448 = vrot.lane.b32.xlu0 %v1308_v9, %s1074_s20  ;;  %v1449_v40 = vpop.permute.xlu2 %335  ;;  %v1544_v9 = vld [vmem:[%s1262_s6 + $0xb8] sm:$0xff] }
  0xf0   : > { %v314_v41 = vpop.permute.xlu1 %313 }
  0xf1   : > { %v310_v42 = vpop.permute.xlu0 %309  ;;  %v549_v51 = vsel %vm545_vm0, %v1341_v19, %v314_v41 }
  0xf5   : > { %458 = vrot.lane.b32.xlu2 %v1326_v15, %s1074_s20  ;;  %v547_v15 = vsel %vm545_vm0, %v1344_v20, %v310_v42  ;;  %v1584_v42 = vld [vmem:[%s1262_s6 + $0xc8] sm:$0xff] }
  0xf6   : > { %456 = vrot.lane.b32.xlu1 %v286_v17, %s1074_s20  ;;  %1943 = vst [vmem:[#allocation13_spill] sm:$0xff] %v1584_v42 }
  0xf7   : > { %454 = vrot.lane.b32.xlu0 %v1317_v12, %s1074_s20  ;;  %v1461_v45 = vpop.permute.xlu2 %375 }
  0xf8   : > { %v1459_v44 = vpop.permute.xlu1 %321  ;;  %v564_v47 = vsel %vm563_vm1, %v546_v43, %v1461_v45  ;;  %v1577_v43 = vld [vmem:[%s1262_s6 + $0xd8] sm:$0xff] }
  0xf9   : > { %v320_v46 = vpop.permute.xlu0 %319  ;;  %650 = vst [vmem:[%s1465_s8] sm:$0xff] %v564_v47  ;;  %v551_v47 = vsel %vm545_vm0, %v1353_v21, %v1428_v35 }
  0xfa   : > { %v552_v59 = vsel %vm545_vm0, %v1356_v22, %v320_v46  ;;  %v1580_v46 = vld [vmem:[%s1262_s6 + $0xe8] sm:$0xff] }
  0xfd   : > { %498 = vrot.lane.b32.xlu2 %v1472_v49, %s1075_s4 }
  0xfe   : > { %496 = vrot.lane.b32.xlu1 %v1469_v48, %s1075_s4 }
  0xff   : > { %494 = vrot.lane.b32.xlu0 %v1475_v50, %s1075_s4  ;;  %v1487_v53 = vpop.permute.xlu2 %381 }
 0x100   : > { %v1485_v52 = vpop.permute.xlu1 %327  ;;  %v567_v55 = vsel %vm563_vm1, %v549_v51, %v1487_v53 }
 0x101   : > { %v326_v54 = vpop.permute.xlu0 %325  ;;  %659 = vst [vmem:[%s1465_s8 + $0x48] sm:$0xff] %v567_v55 }
 0x102   : > { %v555_v3 = vsel %vm545_vm0, %v1371_v25, %v326_v54 }
 0x105   : > { %504 = vrot.lane.b32.xlu2 %v1496_v57, %s1075_s4 }
 0x106   : > { %502 = vrot.lane.b32.xlu1 %v1493_v56, %s1075_s4 }
 0x107   : > { %500 = vrot.lane.b32.xlu0 %v1499_v58, %s1075_s4  ;;  %v1511_v61 = vpop.permute.xlu2 %387 }
 0x108   : > { %v1509_v60 = vpop.permute.xlu1 %333  ;;  %v570_v63 = vsel %vm563_vm1, %v552_v59, %v1511_v61  ;;  %v550_v59 = vsel %vm545_vm0, %v1359_v23, %v1420_v34  ;;  %v554_v34 = vsel %vm545_vm0, %v1368_v24, %v1435_v36  ;;  %v557_v36 = vsel %vm545_vm0, %v1383_v27, %v1441_v37 }
 0x109   : > { %v332_v62 = vpop.permute.xlu0 %331  ;;  %668 = vst [vmem:[%s1465_s8 + $0x90] sm:$0xff] %v570_v63  ;;  %v560_v37 = vsel %vm545_vm0, %v1398_v30, %v1449_v40 }
 0x10a   : > { %v558_v12 = vsel %vm545_vm0, %v1386_v28, %v332_v62 }
 0x10d   : > { %510 = vrot.lane.b32.xlu2 %v1520_v1, %s1075_s4 }
 0x10e   : > { %508 = vrot.lane.b32.xlu1 %v1517_v0, %s1075_s4 }
 0x10f   : > { %506 = vrot.lane.b32.xlu0 %v1523_v2, %s1075_s4  ;;  %v1535_v5 = vpop.permute.xlu2 %393 }
 0x110   : > { %v1533_v4 = vpop.permute.xlu1 %339  ;;  %v573_v7 = vsel %vm563_vm1, %v555_v3, %v1535_v5 }
 0x111   : > { %v338_v6 = vpop.permute.xlu0 %337  ;;  %677 = vst [vmem:[%s1465_s8 + $0xd8] sm:$0xff] %v573_v7  ;;  %v1619_v7 = vld [vmem:[%s1262_s6 + $0xf8] sm:$0xff] }
 0x112   : > { %v561_v51 = vsel %vm545_vm0, %v1401_v31, %v338_v6  ;;  %v1615_v6 = vld [vmem:[%s1262_s6 + $0x108] sm:$0xff]  ;;  %1946 = vst [vmem:[#allocation16_spill] sm:$0xff] %v1619_v7 }
 0x113   : > { %1945 = vst [vmem:[#allocation15_spill] sm:$0xff] %v1615_v6 }
 0x115   : > { %516 = vrot.lane.b32.xlu2 %v1544_v9, %s1075_s4 }
 0x116   : > { %514 = vrot.lane.b32.xlu1 %v1541_v8, %s1075_s4 }
 0x117   : > { %512 = vrot.lane.b32.xlu0 %v1547_v10, %s1075_s4  ;;  %v1562_v14 = vpop.permute.xlu2 %399 }
 0x118   : > { %v1560_v13 = vpop.permute.xlu1 %379  ;;  %v576_v41 = vsel %vm563_vm1, %v558_v12, %v1562_v14 }
 0x119   : > { %v566_v17 = vsel %vm563_vm1, %v548_v11, %v1560_v13  ;;  %v1568_v39 = vpop.permute.xlu0 %377  ;;  %686 = vst [vmem:[%s1465_s8 + $0x120] sm:$0xff] %v576_v41 }
 0x11a   : > { %656 = vst [vmem:[%s1465_s8 + $0x30] sm:$0xff] %v566_v17  ;;  %v565_v38 = vsel %vm563_vm1, %v547_v15, %v1568_v39  ;;  %v553_v15 = vsel %vm545_vm0, %v1374_v26, %v1459_v44  ;;  %v556_v44 = vsel %vm545_vm0, %v1389_v29, %v1485_v52  ;;  %v559_v52 = vsel %vm545_vm0, %v1404_v32, %v1509_v60 }
 0x11b   : > { %653 = vst [vmem:[%s1465_s8 + $0x18] sm:$0xff] %v565_v38 }
 0x11d   : > { %522 = vrot.lane.b32.xlu2 %v1580_v46, %s1075_s4 }
 0x11e   : > { %520 = vrot.lane.b32.xlu1 %v1577_v43, %s1075_s4 }
 0x11f   : > { %518 = vrot.lane.b32.xlu0 %v1584_v42, %s1075_s4  ;;  %v1599_v55 = vpop.permute.xlu2 %405 }
 0x120   : > { %v1597_v54 = vpop.permute.xlu1 %385  ;;  %1944 = vst [vmem:[#allocation14_spill] sm:$0xff] %v1599_v55  ;;  %v579_v35 = vsel %vm563_vm1, %v561_v51, %v1599_v55 }
 0x121   : > { %v569_v62 = vsel %vm563_vm1, %v551_v47, %v1597_v54  ;;  %v1606_v63 = vpop.permute.xlu0 %383  ;;  %695 = vst [vmem:[%s1465_s8 + $0x168] sm:$0xff] %v579_v35 }
 0x122   : > { %665 = vst [vmem:[%s1465_s8 + $0x78] sm:$0xff] %v569_v62  ;;  %v568_v3 = vsel %vm563_vm1, %v550_v59, %v1606_v63 }
 0x123   : > { %662 = vst [vmem:[%s1465_s8 + $0x60] sm:$0xff] %v568_v3 }
 0x126   : > { %526 = vrot.lane.b32.xlu1 %v1615_v6, %s1075_s4 }
 0x127   : > { %524 = vrot.lane.b32.xlu0 %v1619_v7, %s1075_s4  ;;  %v1630_v12 = vpop.permute.xlu2 %428 }
 0x128   : > { %v1628_v11 = vpop.permute.xlu1 %391 }
 0x129   : > { %v572_v17 = vsel %vm563_vm1, %v554_v34, %v1628_v11  ;;  %v1637_v41 = vpop.permute.xlu0 %389 }
 0x12a   : > { %674 = vst [vmem:[%s1465_s8 + $0xc0] sm:$0xff] %v572_v17  ;;  %v571_v38 = vsel %vm563_vm1, %v553_v15, %v1637_v41 }
 0x12b   : > { %671 = vst [vmem:[%s1465_s8 + $0xa8] sm:$0xff] %v571_v38 }
 0x12f   : > { %v1648_v51 = vpop.permute.xlu2 %434 }
 0x130   : > { %v1646_v47 = vpop.permute.xlu1 %397 }
 0x131   : > { %v575_v59 = vsel %vm563_vm1, %v557_v36, %v1646_v47  ;;  %v1655_v62 = vpop.permute.xlu0 %395 }
 0x132   : > { %683 = vst [vmem:[%s1465_s8 + $0x108] sm:$0xff] %v575_v59  ;;  %v574_v35 = vsel %vm563_vm1, %v556_v44, %v1655_v62  ;;  %v562_v44 = vsel %vm545_vm0, %v1413_v33, %v1533_v4 }
 0x133   : > { %680 = vst [vmem:[%s1465_s8 + $0xf0] sm:$0xff] %v574_v35 }
 0x137   : > { %v1666_v34 = vpop.permute.xlu2 %440 }
 0x138   : > { %v1664_v3 = vpop.permute.xlu1 %403 }
 0x139   : > { %v578_v15 = vsel %vm563_vm1, %v560_v37, %v1664_v3  ;;  %v1673_v17 = vpop.permute.xlu0 %401 }
 0x13a   : > { %692 = vst [vmem:[%s1465_s8 + $0x150] sm:$0xff] %v578_v15  ;;  %v577_v38 = vsel %vm563_vm1, %v559_v52, %v1673_v17 }
 0x13b   : > { %689 = vst [vmem:[%s1465_s8 + $0x138] sm:$0xff] %v577_v38 }
 0x13f   : > { %v1679_v40 = vpop.permute.xlu2 %446 }
 0x140   : > { %v427_v36 = vpop.permute.xlu1 %426 }
 0x141   : > { %v1684_v59 = vpop.permute.xlu0 %407 }
 0x142   : > { %1947 = vst [vmem:[#allocation17_spill] sm:$0xff] %v1684_v59  ;;  %v580_v60 = vsel %vm563_vm1, %v562_v44, %v1684_v59 }
 0x143   : > { %698 = vst [vmem:[%s1465_s8 + $0x180] sm:$0xff] %v580_v60 }
 0x147   : > { %v1689_v37 = vpop.permute.xlu2 %452 }
 0x148   : > { %v433_v35 = vpop.permute.xlu1 %432 }
 0x149   : > { %v431_v52 = vpop.permute.xlu0 %430 }
 0x14a   : > { %v584_v4 = vsel %vm581_vm2, %v431_v52, %v1338_v18 }
 0x14f   : > { %v1693_v38 = vpop.permute.xlu2 %458 }
 0x150   : > { %v1691_v15 = vpop.permute.xlu1 %438  ;;  %1948 = vst [vmem:[#allocation18_spill] sm:$0xff] %v1693_v38 }
 0x151   : > { %v437_v7 = vpop.permute.xlu0 %436 }
 0x152   : > { %v587_v38 = vsel %vm581_vm2, %v437_v7, %v1353_v21 }
 0x157   : > { %v499_v44 = vpop.permute.xlu2 %498 }
 0x158   : > { %v1697_v55 = vpop.permute.xlu1 %444  ;;  %v601_v6 = vsel %vm563_vm1, %v584_v4, %v499_v44  ;;  %v618_v59 = vsel %vm545_vm0, %v499_v44, %v1560_v13 }
 0x159   : > { %v443_v60 = vpop.permute.xlu0 %442  ;;  %v635_v31 = vsel %vm581_vm2, %v618_v59, %v1472_v49  ;;  %657 = vst [vmem:[%s1465_s8 + $0x38] sm:$0xff] %v601_v6 }
 0x15a   : > { %658 = vst [vmem:[%s1465_s8 + $0x40] sm:$0xff] %v635_v31  ;;  %v590_v31 = vsel %vm581_vm2, %v443_v60, %v1368_v24  ;;  %v583_v24 = vsel %vm581_vm2, %v1630_v12, %v1344_v20 }
 0x15f   : > { %v505_v52 = vpop.permute.xlu2 %504 }
 0x160   : > { %v1708_v18 = vpop.permute.xlu1 %450  ;;  %v604_v42 = vsel %vm563_vm1, %v587_v38, %v505_v52  ;;  %v621_v4 = vsel %vm545_vm0, %v505_v52, %v1597_v54  ;;  %v582_v38 = vsel %vm581_vm2, %v427_v36, %v1329_v16 }
 0x161   : > { %v449_v33 = vpop.permute.xlu0 %448  ;;  %v638_v13 = vsel %vm581_vm2, %v621_v4, %v1496_v57  ;;  %666 = vst [vmem:[%s1465_s8 + $0x80] sm:$0xff] %v604_v42 }
 0x162   : > { %667 = vst [vmem:[%s1465_s8 + $0x88] sm:$0xff] %v638_v13  ;;  %v593_v20 = vsel %vm581_vm2, %v449_v33, %v1383_v27  ;;  %v586_v33 = vsel %vm581_vm2, %v1648_v51, %v1359_v23 }
 0x167   : > { %v511_v49 = vpop.permute.xlu2 %510 }
 0x168   : > { %v1719_v21 = vpop.permute.xlu1 %456  ;;  %v607_v7 = vsel %vm563_vm1, %v590_v31, %v511_v49  ;;  %v624_v59 = vsel %vm545_vm0, %v511_v49, %v1628_v11 }
 0x169   : > { %v455_v6 = vpop.permute.xlu0 %454  ;;  %v641_v54 = vsel %vm581_vm2, %v624_v59, %v1520_v1  ;;  %675 = vst [vmem:[%s1465_s8 + $0xc8] sm:$0xff] %v607_v7 }
 0x16a   : > { %676 = vst [vmem:[%s1465_s8 + $0xd0] sm:$0xff] %v641_v54  ;;  %v596_v23 = vsel %vm581_vm2, %v455_v6, %v1398_v30 }
 0x16f   : > { %v517_v42 = vpop.permute.xlu2 %516 }
 0x170   : > { %v497_v57 = vpop.permute.xlu1 %496  ;;  %v627_v60 = vsel %vm545_vm0, %v517_v42, %v1646_v47  ;;  %v610_v52 = vsel %vm563_vm1, %v593_v20, %v517_v42  ;;  %v1954_v20 = vld [vmem:[#allocation15_spill] sm:$0xff] }
 0x171   : > { %v600_v11 = vsel %vm563_vm1, %v583_v24, %v497_v57  ;;  %v617_v1 = vsel %vm545_vm0, %v497_v57, %v1568_v39  ;;  %v495_v44 = vpop.permute.xlu0 %494  ;;  %v644_v27 = vsel %vm581_vm2, %v627_v60, %v1544_v9  ;;  %684 = vst [vmem:[%s1465_s8 + $0x110] sm:$0xff] %v610_v52  ;;  %v1956_v52 = vld [vmem:[#allocation16_spill] sm:$0xff] }
 0x172   : > { %v634_v12 = vsel %vm581_vm2, %v617_v1, %v1469_v48  ;;  %654 = vst [vmem:[%s1465_s8 + $0x20] sm:$0xff] %v600_v11  ;;  %v599_v16 = vsel %vm563_vm1, %v582_v38, %v495_v44  ;;  %v616_v36 = vsel %vm545_vm0, %v495_v44, %v1461_v45  ;;  %v1952_v38 = vld [vmem:[#allocation11_spill] sm:$0xff]  ;;  %v1953_v1 = vld [vmem:[#allocation17_spill] sm:$0xff] }
 0x173   : > { %655 = vst [vmem:[%s1465_s8 + $0x28] sm:$0xff] %v634_v12  ;;  %v633_v39 = vsel %vm581_vm2, %v616_v36, %v1475_v50  ;;  %v585_v50 = vsel %vm581_vm2, %v433_v35, %v1341_v19  ;;  %v597_v11 = vsel %vm581_vm2, %v1719_v21, %v1952_v38  ;;  %v1955_v36 = vld [vmem:[#allocation14_spill] sm:$0xff] }
 0x174   : > { %651 = vst [vmem:[%s1465_s8 + $0x8] sm:$0xff] %v599_v16 }
 0x175   : > { %652 = vst [vmem:[%s1465_s8 + $0x10] sm:$0xff] %v633_v39 }
 0x176   : > { %685 = vst [vmem:[%s1465_s8 + $0x118] sm:$0xff] %v644_v27 }
 0x177   : > { %v523_v48 = vpop.permute.xlu2 %522 }
 0x178   : > { %v503_v45 = vpop.permute.xlu1 %502  ;;  %v630_v13 = vsel %vm545_vm0, %v523_v48, %v1664_v3  ;;  %v613_v31 = vsel %vm563_vm1, %v596_v23, %v523_v48 }
 0x179   : > { %v603_v47 = vsel %vm563_vm1, %v586_v33, %v503_v45  ;;  %v620_v9 = vsel %vm545_vm0, %v503_v45, %v1606_v63  ;;  %v501_v4 = vpop.permute.xlu0 %500  ;;  %v647_v30 = vsel %vm581_vm2, %v630_v13, %v1580_v46  ;;  %693 = vst [vmem:[%s1465_s8 + $0x158] sm:$0xff] %v613_v31 }
 0x17a   : > { %v637_v51 = vsel %vm581_vm2, %v620_v9, %v1493_v56  ;;  %663 = vst [vmem:[%s1465_s8 + $0x68] sm:$0xff] %v603_v47  ;;  %v602_v19 = vsel %vm563_vm1, %v585_v50, %v501_v4  ;;  %v619_v35 = vsel %vm545_vm0, %v501_v4, %v1487_v53  ;;  %v589_v53 = vsel %vm581_vm2, %v1666_v34, %v1374_v26 }
 0x17b   : > { %664 = vst [vmem:[%s1465_s8 + $0x70] sm:$0xff] %v637_v51  ;;  %v636_v63 = vsel %vm581_vm2, %v619_v35, %v1499_v58  ;;  %v588_v58 = vsel %vm581_vm2, %v1691_v15, %v1356_v22  ;;  %v591_v34 = vsel %vm581_vm2, %v1697_v55, %v1371_v25  ;;  %v595_v55 = vsel %vm581_vm2, %v1689_v37, %v1404_v32  ;;  %v1949_v37 = vld [vmem:[#allocation13_spill] sm:$0xff] }
 0x17c   : > { %660 = vst [vmem:[%s1465_s8 + $0x50] sm:$0xff] %v602_v19 }
 0x17d   : > { %661 = vst [vmem:[%s1465_s8 + $0x58] sm:$0xff] %v636_v63 }
 0x17e   : > { %694 = vst [vmem:[%s1465_s8 + $0x160] sm:$0xff] %v647_v30 }
 0x180   : > { %v509_v56 = vpop.permute.xlu1 %508 }
 0x181   : > { %v606_v3 = vsel %vm563_vm1, %v589_v53, %v509_v56  ;;  %v623_v49 = vsel %vm545_vm0, %v509_v56, %v1637_v41  ;;  %v507_v46 = vpop.permute.xlu0 %506  ;;  %v592_v41 = vsel %vm581_vm2, %v1679_v40, %v1389_v29 }
 0x182   : > { %v640_v6 = vsel %vm581_vm2, %v623_v49, %v1517_v0  ;;  %672 = vst [vmem:[%s1465_s8 + $0xb0] sm:$0xff] %v606_v3  ;;  %v605_v7 = vsel %vm563_vm1, %v588_v58, %v507_v46  ;;  %v622_v26 = vsel %vm545_vm0, %v507_v46, %v1511_v61 }
 0x183   : > { %673 = vst [vmem:[%s1465_s8 + $0xb8] sm:$0xff] %v640_v6  ;;  %v639_v22 = vsel %vm581_vm2, %v622_v26, %v1523_v2 }
 0x184   : > { %669 = vst [vmem:[%s1465_s8 + $0x98] sm:$0xff] %v605_v7 }
 0x185   : > { %670 = vst [vmem:[%s1465_s8 + $0xa0] sm:$0xff] %v639_v22 }
 0x188   : > { %v515_v0 = vpop.permute.xlu1 %514 }
 0x189   : > { %v609_v15 = vsel %vm563_vm1, %v592_v41, %v515_v0  ;;  %v626_v61 = vsel %vm545_vm0, %v515_v0, %v1655_v62  ;;  %v513_v59 = vpop.permute.xlu0 %512  ;;  %v594_v62 = vsel %vm581_vm2, %v1708_v18, %v1386_v28  ;;  %v1951_v18 = vld [vmem:[#allocation18_spill] sm:$0xff] }
 0x18a   : > { %v643_v2 = vsel %vm581_vm2, %v626_v61, %v1541_v8  ;;  %681 = vst [vmem:[%s1465_s8 + $0xf8] sm:$0xff] %v609_v15  ;;  %v608_v54 = vsel %vm563_vm1, %v591_v34, %v513_v59  ;;  %v625_v29 = vsel %vm545_vm0, %v513_v59, %v1535_v5 }
 0x18b   : > { %682 = vst [vmem:[%s1465_s8 + $0x100] sm:$0xff] %v643_v2  ;;  %v642_v25 = vsel %vm581_vm2, %v625_v29, %v1547_v10 }
 0x18c   : > { %678 = vst [vmem:[%s1465_s8 + $0xe0] sm:$0xff] %v608_v54 }
 0x18d   : > { %679 = vst [vmem:[%s1465_s8 + $0xe8] sm:$0xff] %v642_v25 }
 0x190   : > { %v521_v8 = vpop.permute.xlu1 %520 }
 0x191   : > { %v612_v40 = vsel %vm563_vm1, %v595_v55, %v521_v8  ;;  %v629_v5 = vsel %vm545_vm0, %v521_v8, %v1673_v17  ;;  %v519_v24 = vpop.permute.xlu0 %518  ;;  %v1950_v17 = vld [vmem:[#allocation12_spill] sm:$0xff] }
 0x192   : > { %v646_v10 = vsel %vm581_vm2, %v629_v5, %v1577_v43  ;;  %690 = vst [vmem:[%s1465_s8 + $0x140] sm:$0xff] %v612_v40  ;;  %v611_v57 = vsel %vm563_vm1, %v594_v62, %v519_v24  ;;  %v628_v32 = vsel %vm545_vm0, %v519_v24, %v1562_v14  ;;  %v598_v43 = vsel %vm581_vm2, %v1951_v18, %v1950_v17 }
 0x193   : > { %691 = vst [vmem:[%s1465_s8 + $0x148] sm:$0xff] %v646_v10  ;;  %v645_v28 = vsel %vm581_vm2, %v628_v32, %v1949_v37 }
 0x194   : > { %687 = vst [vmem:[%s1465_s8 + $0x128] sm:$0xff] %v611_v57 }
 0x195   : > { %688 = vst [vmem:[%s1465_s8 + $0x130] sm:$0xff] %v645_v28 }
 0x198   : > { %v527_v42 = vpop.permute.xlu1 %526 }
 0x199   : > { %v615_v14 = vsel %vm563_vm1, %v598_v43, %v527_v42  ;;  %v632_v44 = vsel %vm545_vm0, %v527_v42, %v1953_v1  ;;  %v525_v60 = vpop.permute.xlu0 %524  ;;  %708 = sbr.rel (!%p1142_p9) target bundleno = 450 (0x1c2), region = 40 }
 0x19a   : > { %v649_v12 = vsel %vm581_vm2, %v632_v44, %v1954_v20  ;;  %699 = vst [vmem:[%s1465_s8 + $0x188] sm:$0xff] %v615_v14  ;;  %v614_v16 = vsel %vm563_vm1, %v597_v11, %v525_v60  ;;  %v631_v39 = vsel %vm545_vm0, %v525_v60, %v1955_v36 }
 0x19b   : > { %700 = vst [vmem:[%s1465_s8 + $0x190] sm:$0xff] %v649_v12  ;;  %v648_v27 = vsel %vm581_vm2, %v631_v39, %v1956_v52 }
 0x19c   : > { %696 = vst [vmem:[%s1465_s8 + $0x170] sm:$0xff] %v614_v16 }
 0x19d   : > { %697 = vst [vmem:[%s1465_s8 + $0x178] sm:$0xff] %v648_v27 }
 0x19e   : > { %s1969_s17 = smov (!%p711_p6, %s710_s17), 17 }
 0x19f   : > { %s839_s16 = smul.u32 24, %s1969_s17 }
 0x1a1   : > { %s715_s27 = ssub.s32 408, %s839_s16 }
 0x1a2   : > { %s716_s25 = sshll.u32 %s715_s27, 4 }
 0x1a3   : > { %717 = vsyncadd %s702_s26, %s716_s25  ;;  %p1870_p5 = scmp.ne.s32.totalorder %s839_s16, 0  ;;  %s863_s29 = smul.u32 408, %s1115_s13 }
 0x1a4   : > { %s723_s21 = sshll.u32 %s1465_s8, 4  ;;  %s1876_s5 = smul.u32 384, %s1969_s17  ;;  %s1881_s21 = int_to_ptr.vmem [resolvable:$true] %s723_s21 }
 0x1a5   : > { %s721_s14 = scalar_lea.hbm %s1926_s2, %s863_s29  ;;  %s984_s7 = sshra.s32 %s1881_s21, 4  ;;  %s985_s7 = int_to_ptr.vmem [resolvable:$true] %s984_s7 }
 0x1a6   : > { %s725_s6 = sshll.u32 %s721_s14, 4  ;;  %s986_s20 = sshrl.u32 %s1876_s5, 4  ;;  %s1883_s6 = int_to_ptr.hbm [resolvable:$true] %s725_s6 }
 0x1a7   : > { %s1022_s13 = sshll.u32 %s986_s20, 4  ;;  %s989_s23 = sadd.s32 1, %s986_s20 }
 0x1a8   : > { %p988_p9 = scmp.ne.s32.totalorder %s1022_s13, %s1876_s5  ;;  %s1076_s4 = smov [#allocation7]  }
 0x1a9   : > { %s995_s30 = scalar_lea.vmem %s1076_s4, 816 }
 0x1aa   : > { %s1971_s23 = smov (!%p988_p9, %s989_s23), %s986_s20 }
 0x1ab   : > { %s991_s8 = scalar_lea.vmem %s985_s7, %s1971_s23 }
 0x1ac   : > { %p992_p4 = scmp.ne.s32.totalorder %s985_s7, %s991_s8  ;;  %p997_p12 = scmp.lt.s32.totalorder %s995_s30, %s991_s8 }
 0x1ae   : > { %p993_p7 = pnand %p992_p4, %p1870_p5 }
 0x1b0   : > { %p994_p8 = pneg %p993_p7 }
 0x1b2   : > { %p999_p0 = pnand %p997_p12, %p994_p8 }
 0x1b4   : > { %1002 = shalt.err (!%p999_p0)
}
 0x1b5   : > { %s1003_s17 = sshra.s32 %s1883_s6, 4  ;;  %s1014_s29 = scalar_lea.hbm %s1926_s2, 792  ;;  %s1004_s17 = int_to_ptr.hbm [resolvable:$true] %s1003_s17 }
 0x1b6   : > { %s1010_s16 = scalar_lea.hbm %s1004_s17, %s1971_s23  ;;  %p1015_p13 = scmp.lt.s32.totalorder %s1004_s17, %s1926_s2 }
 0x1b7   : > { %p1011_p1 = scmp.ne.s32.totalorder %s1004_s17, %s1010_s16  ;;  %p1016_p2 = scmp.lt.s32.totalorder %s1014_s29, %s1010_s16 }
 0x1b9   : > { %p1012_p10 = pnand %p1011_p1, %p1870_p5  ;;  %p1017_p3 = por %p1016_p2, %p1015_p13 }
 0x1bb   : > { %p1013_p11 = pneg %p1012_p10 }
 0x1bd   : > { %p1018_p6 = pnand %p1017_p3, %p1013_p11 }
 0x1bf   : > { %1021 = shalt.err (!%p1018_p6)
}
 0x1c0   : > { %s1077_s14 = smov 384   ;;  %s1078_s7 = smov 24  }
 0x1c1   : > { %731 = dma.vmem_to_hbm [thread:$0]  (%p1870_p5), %s1881_s21, %s1876_s5, %s1883_s6, %s702_s26, %s1077_s14, %s1077_s14, %s1078_s7  }
 0x1c2 PF: > { %s740_s20 = sand.u32 1, %s1053_s9   ;;  %p1958_p9 = scmp.ne.s32.totalorder %s1938_s22, 0 }
 0x1c3   : > { %p1959_p4 = scmp.ge.s32.totalorder %s1065_s12, 2  ;;  %s741_s13 = scalar_lea.sflag [#allocation4], %s740_s20 }
 0x1c5   : > { %p860_p7 = pnand %p1959_p4, %p1958_p9 }
 0x1c7   : > { %p861_p8 = pneg %p860_p7 }
 0x1c9   : > { %1048 = dma.done.wait (%p861_p8), %s741_s13, 6528  }
 0x1ca   : > { %1050 = vsyncadd (%p861_p8), %s741_s13, 4294960768  ;;  %p18_p12 = scmp.ge.s32.totalorder %s1119_s15, 4   ;;  %s1960_s9 = smov %s1057_s10 }
 0x1cb   : > { %s1961_s10 = smov %s1061_s11  ;;  %s1962_s11 = smov %s1131_s18 }
 0x1cc   : > { %s1963_s12 = smov %s1119_s15  ;;  %20 = sbr.rel (!%p18_p12) target bundleno = 7 (0x7), region = 86 }
 0x1d1   :  { %747 = vsyncpa [#allocation3], 1 }
 0x1d2   :  { %749 = vsyncpa [#allocation3 + $0x1], 1 }
 0x1d3   :  { %750 = vsyncpa [#allocation6], 1 }
 0x1d4   :  { %752 = vsyncpa [#allocation6 + $0x1], 1 }
 0x1d5   :  { %753 = vsyncpa [#allocation4], 1 }
 0x1d6   :  { %755 = vsyncpa [#allocation4 + $0x1], 1 }

</bundles_post_ra>
